<compile_context>
chip_gen: v7x
topology: tpu7x:2x2x1
jax: 0.10.0
libtpu: 0.0.40
codegen_flags: <defaults>
</compile_context>

<pallas_src>
import functools
import math

import jax
import jax.numpy as jnp
from jax.experimental import pallas as pl
from jax.experimental.pallas import tpu as pltpu


# ----------------------------------------------------------------------------
# Kernel 1: furthest point sampling + gather of the sampled coordinates.
# One grid step per batch; the npoint loop is inherently sequential and runs as
# an in-kernel fori_loop on [1, N] lane vectors (VPU + lane reductions only).
# ----------------------------------------------------------------------------
def _fps_kernel(xyz_ref, new_xyz_ref, *, npoint):
    x = xyz_ref[0].astype(jnp.float32)                        # [3, N] channels-first
    n = x.shape[1]
    lane_iota = jax.lax.broadcasted_iota(jnp.int32, (1, n), 1)
    col_iota = jax.lax.broadcasted_iota(jnp.int32, (1, npoint), 1)

    def body(i, carry):
        dist, acc = carry                                     # [1, N], [3, npoint]
        mx = jnp.max(dist, axis=-1, keepdims=True)            # current farthest distance
        cand = jnp.where(dist == mx, lane_iota, n)
        sel = jnp.min(cand, axis=-1, keepdims=True)           # first argmax (tie -> low idx)
        oh = (lane_iota == sel).astype(jnp.float32)           # [1, N] exact one-hot
        coords = jnp.sum(x * oh, axis=-1, keepdims=True)      # [3, 1] exact coordinate gather
        acc = acc + coords * (col_iota == i).astype(jnp.float32)
        diff = x - coords                                     # [3, N]
        d0 = diff[0:1, :]
        d1 = diff[1:2, :]
        d2 = diff[2:3, :]
        dnew = d0 * d0 + d1 * d1 + d2 * d2                    # [1, N], VPU only
        return jnp.minimum(dist, dnew), acc

    dist0 = jnp.full((1, n), 1e10, jnp.float32)
    acc0 = jnp.zeros((3, npoint), jnp.float32)
    _, acc = jax.lax.fori_loop(0, npoint, body, (dist0, acc0))
    new_xyz_ref[0] = acc.astype(new_xyz_ref.dtype)


def furthest_point_sample(xyz, npoint):
    """xyz [B, 3, N] -> sampled coordinates new_xyz [B, 3, npoint] (PyTorch layout)."""
    B, _, N = xyz.shape
    return pl.pallas_call(
        functools.partial(_fps_kernel, npoint=npoint),
        out_shape=jax.ShapeDtypeStruct((B, 3, npoint), jnp.float32),
        grid_spec=pltpu.PrefetchScalarGridSpec(
            num_scalar_prefetch=0,
            grid=(B,),
            in_specs=[pl.BlockSpec((1, 3, N), lambda b: (b, 0, 0))],
            out_specs=pl.BlockSpec((1, 3, npoint), lambda b: (b, 0, 0)),
        ),
        compiler_params=pltpu.CompilerParams(dimension_semantics=("parallel",)),
    )(xyz)


# ----------------------------------------------------------------------------
# Kernel 2: fused kNN grouping + (Conv2d 1x1 + folded BN + ReLU) MLP + max over
# the nsample neighbours, one grid step per (batch, S-tile).
# ----------------------------------------------------------------------------
def _make_sa_kernel(num_rest, nsample):
    def kernel(*refs):
        xyz_ref, feat_ref, cent_ref, w1x_ref, w1f_ref, w1xt_ref, sb1_ref = refs[:7]
        rest_refs = refs[7:7 + 2 * num_rest]
        out_ref = refs[7 + 2 * num_rest]

        xcf = xyz_ref[0].astype(jnp.float32)                  # [3, N]  (channels-first)
        feat = feat_ref[0].astype(jnp.float32)                # [D, N]  (channels-first)
        cent = cent_ref[0].astype(jnp.float32)                # [TS, 3] (centres, chan-last)
        w1x = w1x_ref[...]                                    # [C1, 3]
        w1f = w1f_ref[...]                                    # [C1, D]
        w1xt = w1xt_ref[...]                                  # [3, C1]
        sb1 = sb1_ref[...]                                    # [2, C1] (scale, bias)
        n = xcf.shape[1]
        ts = cent.shape[0]
        c_out = out_ref.shape[1]

        # kNN squared distances [TS, N]: per-coordinate on the VPU (no MXU,
        # no catastrophic cancellation from the expanded-square formula).
        d = jnp.zeros((ts, n), jnp.float32)
        for c in range(3):
            diff = cent[:, c:c + 1] - xcf[c:c + 1, :]
            d = d + diff * diff

        # Grouping fused into the first conv layer (exact by linearity):
        #   W1x @ (x_j - c) + W1f @ f_j == (W1x@X + W1f@F)[:, j] - W1x @ c
        proj = (jnp.dot(w1x, xcf, preferred_element_type=jnp.float32)
                + jnp.dot(w1f, feat, preferred_element_type=jnp.float32))     # [C1, N]
        proj_t = proj.T                                                       # [N, C1]
        cproj = jnp.dot(cent, w1xt, preferred_element_type=jnp.float32)       # [TS, C1]

        s1, b1 = sb1[0:1, :], sb1[1:2, :]
        rest = []
        for i in range(num_rest):
            w = rest_refs[2 * i][...]                         # [C_in, C_out] (pre-transposed)
            sb = rest_refs[2 * i + 1][...]                    # [2, C_out]
            rest.append((w, sb[0:1, :], sb[1:2, :]))

        lane_iota = jax.lax.broadcasted_iota(jnp.int32, (ts, n), 1)

        def body(k, carry):
            dd, acc = carry
            # iterated masked argmin over the lane axis (first-index tie-break)
            mn = jnp.min(dd, axis=-1, keepdims=True)          # [TS, 1]
            cand = jnp.where(dd == mn, lane_iota, n)
            sel = jnp.min(cand, axis=-1, keepdims=True)       # [TS, 1]
            onehot = lane_iota == sel                         # [TS, N]
            dd = jnp.where(onehot, jnp.float32(jnp.inf), dd)  # mask the selected neighbour
            oh = onehot.astype(jnp.float32)
            # one-hot gather + first conv layer in a single MXU matmul
            h = jnp.dot(oh, proj_t, preferred_element_type=jnp.float32) - cproj
            h = jnp.maximum(h * s1 + b1, 0.0)                 # folded BN (eval) + ReLU
            for (w, s, b) in rest:
                h = jnp.dot(h, w, preferred_element_type=jnp.float32)
                h = jnp.maximum(h * s + b, 0.0)
            return dd, jnp.maximum(acc, h)                    # running max over neighbours

        acc0 = jnp.full((ts, c_out), -jnp.inf, jnp.float32)
        _, acc = jax.lax.fori_loop(0, nsample, body, (d, acc0))

        # channels-first, lane-dense (S in lanes) store
        out_ref[0] = acc.T.astype(out_ref.dtype)

    return kernel


def _pick_tile(s):
    # largest lane-aligned S tile that keeps [TS, N] temporaries comfortably
    # inside the 32 MiB scoped-VMEM default (and v7x's 64 MiB physical VMEM)
    for t in (256, 128):
        if s % t == 0:
            return t
    return s      # small / unaligned S: a single tile (block == full dim)


def sa_group_mlp(xyz, points, new_xyz_t, w1x, w1f, w1xt, sb1, rest, *, nsample):
    """xyz [B,3,N], points [B,D,N], new_xyz_t [B,S,3] -> new_points [B,C_out,S]."""
    B, _, N = xyz.shape
    D = points.shape[1]
    S = new_xyz_t.shape[1]
    assert nsample <= N, "nsample must not exceed the number of input points"
    ts = _pick_tile(S)
    c_out = rest[-1][0].shape[1] if rest else w1x.shape[0]

    in_specs = [
        pl.BlockSpec((1, 3, N), lambda b, s: (b, 0, 0)),      # xyz (resident per batch)
        pl.BlockSpec((1, D, N), lambda b, s: (b, 0, 0)),      # features (resident per batch)
        pl.BlockSpec((1, ts, 3), lambda b, s: (b, s, 0)),     # sampled centres tile
        pl.BlockSpec(w1x.shape, lambda b, s: (0, 0)),
        pl.BlockSpec(w1f.shape, lambda b, s: (0, 0)),
        pl.BlockSpec(w1xt.shape, lambda b, s: (0, 0)),
        pl.BlockSpec(sb1.shape, lambda b, s: (0, 0)),
    ]
    operands = [xyz, points, new_xyz_t, w1x, w1f, w1xt, sb1]
    for (w, sb) in rest:
        in_specs.append(pl.BlockSpec(w.shape, lambda b, s: (0, 0)))
        in_specs.append(pl.BlockSpec(sb.shape, lambda b, s: (0, 0)))
        operands += [w, sb]

    return pl.pallas_call(
        _make_sa_kernel(len(rest), nsample),
        out_shape=jax.ShapeDtypeStruct((B, c_out, S), jnp.float32),
        grid_spec=pltpu.PrefetchScalarGridSpec(
            num_scalar_prefetch=0,
            grid=(B, S // ts),
            in_specs=in_specs,
            out_specs=pl.BlockSpec((1, c_out, ts), lambda b, s: (b, 0, s)),
        ),
        compiler_params=pltpu.CompilerParams(
            dimension_semantics=("parallel", "parallel")),
    )(*operands)


# ----------------------------------------------------------------------------
# Parameter init (deterministic, synthetic): Conv2d(k=1, bias=False) weights and
# BatchNorm2d eval-mode running stats folded into per-channel scale/bias.
# ----------------------------------------------------------------------------
def init_params(in_channel, mlp, key, eps=1e-5):
    last = in_channel + 3                      # use_xyz=True: [relative xyz ; features]
    layers = []
    for out in mlp:
        key, kw, kg, kb, km, kv = jax.random.split(key, 6)
        w = jax.random.normal(kw, (out, last), jnp.float32) / math.sqrt(last)
        gamma = 1.0 + 0.1 * jax.random.normal(kg, (out,), jnp.float32)
        beta = 0.1 * jax.random.normal(kb, (out,), jnp.float32)
        mean = 0.1 * jax.random.normal(km, (out,), jnp.float32)
        var = 0.5 + jnp.abs(jax.random.normal(kv, (out,), jnp.float32))
        scale = gamma / jnp.sqrt(var + eps)
        bias = beta - mean * scale
        layers.append((w, jnp.stack([scale, bias], axis=0)))   # sb [2, out]
        last = out
    (w1, sb1) = layers[0]
    w1x, w1f = w1[:, :3], w1[:, 3:]
    rest = [(w.T, sb) for (w, sb) in layers[1:]]               # pre-transposed [C_in, C_out]
    return w1x, w1f, jnp.transpose(w1x), sb1, rest


# ----------------------------------------------------------------------------
# Module forward (wrapper, PyTorch layout in/out).
# ----------------------------------------------------------------------------
def pointnet_sa_forward(xyz, points, params, *, npoint, nsample):
    """xyz [B,3,N], points [B,D,N] -> (new_xyz [B,3,npoint], new_points [B,C_out,npoint])."""
    w1x, w1f, w1xt, sb1, rest = params
    new_xyz = furthest_point_sample(xyz, npoint)              # [B, 3, S]
    new_xyz_t = jnp.transpose(new_xyz, (0, 2, 1))             # tiny (3-channel) transpose only
    new_points = sa_group_mlp(xyz, points, new_xyz_t, w1x, w1f, w1xt, sb1, rest,
                              nsample=nsample)
    return new_xyz, new_points


# ----------------------------------------------------------------------------
# Pure-JAX reference for the sanity check.
# ----------------------------------------------------------------------------
def ref_forward(xyz, points, params, *, npoint, nsample):
    w1x, w1f, _, sb1, rest = params
    B, _, N = xyz.shape
    xyz_t = jnp.transpose(xyz, (0, 2, 1))                     # [B, N, 3]

    def fps_one(pts):                                         # [N, 3] -> [npoint] indices
        dist = jnp.full((N,), 1e10, jnp.float32)
        far = jnp.int32(0)
        sel = []
        for _ in range(npoint):
            sel.append(far)
            c = pts[far]
            d = jnp.sum((pts - c) ** 2, axis=-1)
            dist = jnp.minimum(dist, d)
            far = jnp.argmax(dist).astype(jnp.int32)
        return jnp.stack(sel)

    fps_idx = jax.vmap(fps_one)(xyz_t)                        # [B, S]
    new_xyz_t = jax.vmap(lambda p, i: p[i])(xyz_t, fps_idx)   # [B, S, 3]
    new_xyz = jnp.transpose(new_xyz_t, (0, 2, 1))             # [B, 3, S]

    d = jnp.sum((new_xyz_t[:, :, None, :] - xyz_t[:, None, :, :]) ** 2, axis=-1)
    _, idx = jax.lax.top_k(-d, nsample)                       # [B, S, k]
    pts_t = jnp.transpose(points, (0, 2, 1))                  # [B, N, D]
    g_xyz = jax.vmap(lambda p, i: p[i])(xyz_t, idx)           # [B, S, k, 3]
    g_feat = jax.vmap(lambda p, i: p[i])(pts_t, idx)          # [B, S, k, D]
    rel = g_xyz - new_xyz_t[:, :, None, :]
    x = jnp.concatenate([rel, g_feat], axis=-1)               # [B, S, k, 3+D]
    w1 = jnp.concatenate([w1x, w1f], axis=1)                  # [C1, 3+D]
    x = jnp.einsum('bskc,oc->bsko', x, w1, precision='highest')
    x = jnp.maximum(x * sb1[0] + sb1[1], 0.0)
    for (wt, sb) in rest:
        x = jnp.einsum('bsko,op->bskp', x, wt, precision='highest')
        x = jnp.maximum(x * sb[0] + sb[1], 0.0)
    new_points = jnp.max(x, axis=2)                           # [B, S, C_out]
    return new_xyz, jnp.transpose(new_points, (0, 2, 1))


if __name__ == "__main__":
    key = jax.random.PRNGKey(0)
    B, N, D = 2, 16, 4
    npoint, nsample = 8, 4
    mlp = [16, 32]

    k_xyz, k_feat, k_par = jax.random.split(key, 3)
    xyz = jax.random.normal(k_xyz, (B, 3, N), jnp.float32)
    points = jax.random.normal(k_feat, (B, D, N), jnp.float32)
    params = init_params(D, mlp, k_par)

    new_xyz, new_points = pointnet_sa_forward(xyz, points, params,
                                              npoint=npoint, nsample=nsample)
    new_xyz = jax.block_until_ready(new_xyz)
    new_points = jax.block_until_ready(new_points)
    assert new_xyz.shape == (B, 3, npoint), new_xyz.shape
    assert new_points.shape == (B, mlp[-1], npoint), new_points.shape

    ref_xyz, ref_points = ref_forward(xyz, points, params,
                                      npoint=npoint, nsample=nsample)
    err_xyz = float(jnp.max(jnp.abs(new_xyz - ref_xyz)))
    err_pts = float(jnp.max(jnp.abs(new_points - ref_points)))
    assert jnp.allclose(new_xyz, ref_xyz, rtol=1e-3, atol=1e-3), err_xyz
    assert jnp.allclose(new_points, ref_points, rtol=1e-3, atol=1e-3), err_pts

    print("KERNEL_OK")
</pallas_src>

<mosaic_0001>
module attributes {stable_mosaic.version = 11 : i64} {
  func.func @_fps_kernel(%arg0: i32, %arg1: memref<1x3x16xf32, #tpu.memory_space<vmem>>, %arg2: memref<1x3x8xf32, #tpu.memory_space<vmem>>) attributes {dimension_semantics = [#tpu.dimension_semantics<parallel>], iteration_bounds = array<i64: 2>, scalar_prefetch = 0 : i64, scratch_operands = 0 : i64, tpu.core_type = #tpu.core_type<tc>, window_params = [{transform_indices = @transform_0, window_bounds = array<i64: 1, 3, 16>}, {transform_indices = @transform_1, window_bounds = array<i64: 1, 3, 8>}]} {
    %c0 = arith.constant 0 : index
    %c0_0 = arith.constant 0 : index
    %c0_1 = arith.constant 0 : index
    %0 = vector.load %arg1[%c0, %c0_0, %c0_1] : memref<1x3x16xf32, #tpu.memory_space<vmem>>, vector<1x3x16xf32>
    %1 = vector.shape_cast %0 : vector<1x3x16xf32> to vector<3x16xf32>
    %2 = tpu.iota {dimensions = array<i32: 1>} : vector<1x16xi32>
    %3 = tpu.iota {dimensions = array<i32: 1>} : vector<1x8xi32>
    %cst = arith.constant 1.000000e+10 : f32
    %4 = vector.broadcast %cst : f32 to vector<1x16xf32>
    %cst_2 = arith.constant 0.000000e+00 : f32
    %5 = vector.broadcast %cst_2 : f32 to vector<3x8xf32>
    %c0_i32 = arith.constant 0 : i32
    %c8_i32 = arith.constant 8 : i32
    %6 = arith.addi %c0_i32, %c8_i32 : i32
    %c1_i32 = arith.constant 1 : i32
    %7:2 = scf.for %arg3 = %c0_i32 to %6 step %c1_i32 iter_args(%arg4 = %4, %arg5 = %5) -> (vector<1x16xf32>, vector<3x8xf32>)  : i32 {
      %cst_7 = arith.constant dense<0xFF800000> : vector<1xf32>
      %11 = vector.multi_reduction <maximumf>, %arg4, %cst_7 [1] : vector<1x16xf32> to vector<1xf32>
      %12 = vector.shape_cast %11 : vector<1xf32> to vector<1x1xf32>
      %13 = vector.broadcast %12 : vector<1x1xf32> to vector<1x16xf32>
      %14 = arith.cmpf oeq, %arg4, %13 : vector<1x16xf32>
      %c16_i32 = arith.constant 16 : i32
      %15 = vector.broadcast %c16_i32 : i32 to vector<1x16xi32>
      %16 = arith.select %14, %2, %15 : vector<1x16xi1>, vector<1x16xi32>
      %cst_8 = arith.constant dense<2147483647> : vector<1xi32>
      %17 = vector.multi_reduction <minsi>, %16, %cst_8 [1] : vector<1x16xi32> to vector<1xi32>
      %18 = vector.shape_cast %17 : vector<1xi32> to vector<1x1xi32>
      %19 = vector.broadcast %18 : vector<1x1xi32> to vector<1x16xi32>
      %20 = arith.cmpi eq, %2, %19 : vector<1x16xi32>
      %21 = arith.extui %20 : vector<1x16xi1> to vector<1x16xi32>
      %22 = arith.sitofp %21 : vector<1x16xi32> to vector<1x16xf32>
      %23 = vector.broadcast %22 : vector<1x16xf32> to vector<3x16xf32>
      %24 = arith.mulf %1, %23 : vector<3x16xf32>
      %cst_9 = arith.constant dense<0.000000e+00> : vector<3xf32>
      %25 = vector.multi_reduction <add>, %24, %cst_9 [1] : vector<3x16xf32> to vector<3xf32>
      %26 = vector.shape_cast %25 : vector<3xf32> to vector<3x1xf32>
      %27 = vector.broadcast %arg3 : i32 to vector<1x8xi32>
      %28 = arith.cmpi eq, %3, %27 : vector<1x8xi32>
      %29 = arith.extui %28 : vector<1x8xi1> to vector<1x8xi32>
      %30 = arith.sitofp %29 : vector<1x8xi32> to vector<1x8xf32>
      %31 = vector.broadcast %26 : vector<3x1xf32> to vector<3x8xf32>
      %32 = vector.broadcast %30 : vector<1x8xf32> to vector<3x8xf32>
      %33 = arith.mulf %31, %32 : vector<3x8xf32>
      %34 = arith.addf %arg5, %33 : vector<3x8xf32>
      %35 = vector.broadcast %26 : vector<3x1xf32> to vector<3x16xf32>
      %36 = arith.subf %1, %35 : vector<3x16xf32>
      %37 = vector.extract_strided_slice %36 {offsets = [0, 0], sizes = [1, 16], strides = [1, 1]} : vector<3x16xf32> to vector<1x16xf32>
      %38 = vector.extract_strided_slice %36 {offsets = [1, 0], sizes = [1, 16], strides = [1, 1]} : vector<3x16xf32> to vector<1x16xf32>
      %39 = vector.extract_strided_slice %36 {offsets = [2, 0], sizes = [1, 16], strides = [1, 1]} : vector<3x16xf32> to vector<1x16xf32>
      %40 = arith.mulf %37, %37 : vector<1x16xf32>
      %41 = arith.mulf %38, %38 : vector<1x16xf32>
      %42 = arith.addf %40, %41 : vector<1x16xf32>
      %43 = arith.mulf %39, %39 : vector<1x16xf32>
      %44 = arith.addf %42, %43 : vector<1x16xf32>
      %45 = arith.minimumf %arg4, %44 : vector<1x16xf32>
      scf.yield %45, %34 : vector<1x16xf32>, vector<3x8xf32>
    }
    %c8_i32_3 = arith.constant 8 : i32
    %c0_4 = arith.constant 0 : index
    %c0_5 = arith.constant 0 : index
    %c0_6 = arith.constant 0 : index
    %8 = vector.load %arg2[%c0_4, %c0_5, %c0_6] : memref<1x3x8xf32, #tpu.memory_space<vmem>>, vector<1x3x8xf32>
    %9 = vector.shape_cast %8 : vector<1x3x8xf32> to vector<3x8xf32>
    %10 = vector.shape_cast %7#1 : vector<3x8xf32> to vector<1x3x8xf32>
    tpu.vector_store %arg2[%c0_4, %c0_5, %c0_6], %10 {strides = array<i32>} : memref<1x3x8xf32, #tpu.memory_space<vmem>>, vector<1x3x8xf32>,
    return
  }
  func.func @transform_0(%arg0: i32) -> (i32, i32, i32) {
    %c0_i32 = arith.constant 0 : i32
    %c0_i32_0 = arith.constant 0 : i32
    %c0_i32_1 = arith.constant 0 : i32
    return %arg0, %c0_i32, %c0_i32_0 : i32, i32, i32
  }
  func.func @transform_1(%arg0: i32) -> (i32, i32, i32) {
    %c0_i32 = arith.constant 0 : i32
    %c0_i32_0 = arith.constant 0 : i32
    %c0_i32_1 = arith.constant 0 : i32
    return %arg0, %c0_i32, %c0_i32_0 : i32, i32, i32
  }
}

</mosaic_0001>

<bundles_post_ra>
// kernel: tpu_custom_call.1
= control target key start
LH: loop header
LB: loop body
LE: loop exit
PB: predicated region body
PF: predicated region fallthrough
CT: control target
= control target key end

     0   :  { %s325_s6 = smov 0   ;;  %s356_s0 = inlined_call_operand.vmem [shape: f32[2,3,16], index: 0, kind: input, shape index: {}]   ;;  %s357_s1 = inlined_call_operand.vmem [shape: f32[2,3,8], index: 1, kind: output, shape index: {}]  }
   0x1 LB: > { %s238_s7 = sadd.s32 4294967295, %s300_s6   ;;  %p242_p0 = scmp.ge.s32.totalorder %s300_s6, 1  ;;  %s300_s6 = sphi %s325_s6, %s11_s6  }
   0x2   : > { %p86_p1 = scmp.lt.s32.totalorder %s300_s6, 3 }
   0x4   : > { %p87_p2 = pnand %p242_p0, %p86_p1 }
   0x5   : > { %p104_p3 = scmp.lt.s32.totalorder (!%p87_p2), %s238_s7, 1  ;;  %v113_v0 = vlaneseq (!%p87_p2)  ;;  %v302_v3 = vmov (!%p87_p2), 0.0   ;;  %v306_v4 = vmov (!%p87_p2), 1e+10   ;;  %s342_s15 = smov (!%p87_p2), 0  }
   0x6   : > { %90 = sbr.rel (%p87_p2) target bundleno = 618 (0x26a), region = 24 }
   0x7   : > { %v114_v1 = vand.u32 (!%p87_p2), 127, %v113_v0 }
   0xd   : > { %s359_s7 = smov (!%p104_p3, %s238_s7), 1 }
   0xe   : > { %s243_s8 = sshll.u32 %s359_s7, 2 }
   0xf   : > { %s107_s11 = scalar_lea.vmem %s356_s0, %s243_s8  ;;  %s340_s14 = scalar_lea.vmem %s357_s1, %s243_s8 }
  0x10   : > { %v112_v2 = vld [vmem:[%s107_s11] sm:$0x7] }
  0x11 LB: >> { %vm123_vm0 = vcmask 122880   ;;  %v148_v16 = vshrl.u32 %v113_v0, 7  ;;  %v314_v22 = vmov 0.0   ;;  %vm152_vm4 = vcmask 124928   ;;  %s312_s15 = sphi %s342_s15, %s120_s15   ;;  %v308_v4 = vphi %v306_v4, %v171_v4   ;;  %v304_v3 = vphi %v302_v3, %v303_v3  }
  0x12   : >> { %v124_v5 = vsel %vm123_vm0, %v308_v4, -inf  ;;  %v156_v27 = vstv %s312_s15  ;;  %s120_s15 = sadd.s32 1, %s312_s15  }
  0x13   : >> { %125 = vmax.xlane.f32.xlu0 %v124_v5  ;;  %v149_v21 = vsub.s32 0, %v148_v16  ;;  %vm157_vm5 = vcmp.eq.s32.totalorder %v114_v1, %v156_v27  ;;  %p117_p4 = scmp.ge.s32.totalorder %s120_s15, 8  }
  0x14   : >> { %v246_v28 = vsel %vm157_vm5, 1.0, %v314_v22  ;;  %vm172_vm6 = vcmask (%p117_p4), 59392  }
  0xa0   : >> { %v126_v6 = vpop.xlane.xlu0 %125 }
  0xa1   : >> { %vm127_vm1 = vcmp.eq.f32.partialorder %v308_v4, %v126_v6 }
  0xa2   : >> { %v128_v7 = vsel %vm127_vm1, %v114_v1, 16 }
  0xa3   : >> { %v129_v8 = vsel %vm123_vm0, %v128_v7, 2147483647 }
  0xa4   : >> { %v131_v9 = vshra.s32 %v129_v8, 16  ;;  %v130_v11 = vand.u32 65535, %v129_v8 }
  0xa6   : >> { %v133_v10 = vcvt.s32.f32 %v131_v9  ;;  %v132_v13 = vcvt.s32.f32 %v130_v11 }
  0xa8   : >> { %134 = vmin.xlane.f32.xlu0 %v133_v10 }
 0x135   : >> { %v135_v12 = vpop.xlane.xlu0 %134 }
 0x136   : >> { %vm136_vm2 = vcmp.eq.f32.partialorder %v133_v10, %v135_v12  ;;  %v141_v15 = vcvt.f32.s32 %v135_v12 }
 0x137   : >> { %v137_v14 = vsel %vm136_vm2, %v132_v13, inf }
 0x138   : >> { %138 = vmin.xlane.f32.xlu1 %v137_v14  ;;  %v142_v18 = vshll.u32 %v141_v15, 16 }
 0x1c5   : >> { %v139_v17 = vpop.xlane.xlu1 %138 }
 0x1c6   : >> { %v140_v19 = vcvt.f32.s32 %v139_v17 }
 0x1c8   : >> { %v143_v20 = vadd.s32 %v142_v18, %v140_v19 }
 0x1ca   : >> { %vm144_vm3 = vcmp.eq.s32.totalorder %v114_v1, %v143_v20 }
 0x1cb   : >> { %v245_v23 = vsel %vm144_vm3, 1.0, %v314_v22 }
 0x1cc   : >> { %v150_v24 = vrot.slane %v245_v23, %v149_v21 }
 0x1ce   : >> { %v151_v25 = vmul.f32 %v150_v24, %v112_v2 }
 0x1d0   : >> { %v153_v26 = vsel %vm152_vm4, %v151_v25, 0.0 }
 0x1d1   : >> { %154 = vadd.xlane.f32.xlu1 %v153_v26 }
 0x25e   : >> { %v155_v29 = vpop.xlane.xlu1 %154 }
 0x25f   : >> { %v160_v30 = vmul.f32 %v246_v28, %v155_v29  ;;  %v162_v31 = vsub.f32 %v112_v2, %v155_v29 }
 0x261   : >> { %v161_v32 = vadd.f32 %v304_v3, %v160_v30   ;;  %v163_v33 = vmul.f32 %v162_v31, %v162_v31 }
 0x263   : >> { %v165_v34 = vrot.slane %v163_v33, 1  ;;  %v168_v36 = vrot.slane %v163_v33, 2  ;;  %v303_v3 = vmov %v161_v32   ;;  %119 = sbr.rel (!%p117_p4) target bundleno = 17 (0x11), region = 61  ;;  %173 = vst.msk [vmem:[%s340_s14] sm:$0x7] (%p117_p4), %vm172_vm6, %v161_v32 }
 0x265   : >> { %v167_v35 = vadd.f32 %v165_v34, %v163_v33 }
 0x267   : >> { %v170_v37 = vadd.f32 %v168_v36, %v167_v35 }
 0x269   : >> { %v171_v4 = vmin.f32 %v308_v4, %v170_v37  }
 0x26a PF: > { %s11_s6 = sadd.s32 1, %s300_s6  }
 0x26b   : > { %p8_p5 = scmp.ge.s32.totalorder %s11_s6, 4  }
 0x26d   :  { %10 = sbr.rel (!%p8_p5) target bundleno = 1 (0x1), region = 72 }

</bundles_post_ra>
